<compile_context>
chip_gen: v7x
topology: tpu7x:2x2x1
jax: 0.10.0
libtpu: 0.0.40
codegen_flags: <defaults>
</compile_context>

<pallas_src>
import functools

import jax
import jax.numpy as jnp
from jax.experimental import pallas as pl
from jax.experimental.pallas import tpu as pltpu


# ---------------------------------------------------------------------------
# Kernel
# ---------------------------------------------------------------------------
def _rpn_head_kernel(x_ref, w_ref, b_ref, logits_ref, bbox_ref):
    """Fused 1x1-conv for both RPN heads, spatial on the lane axis.

    x_ref:      (1, C, T)    input pixels (NCHW slab, T spatial columns)
    w_ref:      (5A, C)      fused weight  [w_cls ; w_box]
    b_ref:      (5A, 1)      fused bias
    logits_ref: (1, A, T)
    bbox_ref:   (1, 4A, T)
    """
    x = x_ref[0]                                   # (C, T)
    fused = jnp.dot(w_ref[...], x,
                    preferred_element_type=jnp.float32)   # (5A, T) on MXU
    fused = fused + b_ref[...]                     # single lane-broadcast add
    a = logits_ref.shape[1]
    logits_ref[0] = fused[:a, :].astype(logits_ref.dtype)
    bbox_ref[0] = fused[a:, :].astype(bbox_ref.dtype)


# ---------------------------------------------------------------------------
# Wrapper
# ---------------------------------------------------------------------------
_MAX_TILE = 2048      # lanes per spatial tile (mem-bound: bigger is better)
_LANE = 128


def _round_up(x, m):
    return (x + m - 1) * m // m if x % m else x


def _choose_tile(hw_pad):
    """Largest multiple of 128 that divides hw_pad and is <= _MAX_TILE."""
    n128 = hw_pad // _LANE
    best = 1
    for k in range(1, _MAX_TILE // _LANE + 1):
        if n128 % k == 0:
            best = k
    return best * _LANE


def _rpn_head_single(x_nchw, w_fused, b_fused, num_anchors):
    n, c, h, w = x_nchw.shape
    a = num_anchors
    a4 = 4 * num_anchors
    hw = h * w

    x = x_nchw.reshape(n, c, hw)                   # free reshape (row-major)
    hw_pad = _round_up(hw, _LANE)
    if hw_pad != hw:
        x = jnp.pad(x, ((0, 0), (0, 0), (0, hw_pad - hw)))
    t = _choose_tile(hw_pad)
    grid = (n, hw_pad // t)

    logits_flat, bbox_flat = pl.pallas_call(
        _rpn_head_kernel,
        out_shape=(
            jax.ShapeDtypeStruct((n, a, hw_pad), x.dtype),
            jax.ShapeDtypeStruct((n, a4, hw_pad), x.dtype),
        ),
        grid_spec=pltpu.PrefetchScalarGridSpec(
            num_scalar_prefetch=0,
            grid=grid,
            in_specs=[
                pl.BlockSpec((1, c, t), lambda b, i: (b, 0, i)),    # x slab
                pl.BlockSpec((a + a4, c), lambda b, i: (0, 0)),     # fused W
                pl.BlockSpec((a + a4, 1), lambda b, i: (0, 0)),     # fused b
            ],
            out_specs=[
                pl.BlockSpec((1, a, t), lambda b, i: (b, 0, i)),
                pl.BlockSpec((1, a4, t), lambda b, i: (b, 0, i)),
            ],
        ),
        compiler_params=pltpu.CompilerParams(
            dimension_semantics=("parallel", "parallel"),
            # Footprint here is tiny (<8 MiB double-buffered even at C=1024,
            # T=2048); 48 MiB keeps headroom under v7x's 64 MiB physical VMEM.
            vmem_limit_bytes=48 * 1024 * 1024,
        ),
    )(x, w_fused, b_fused)

    if hw_pad != hw:
        logits_flat = logits_flat[:, :, :hw]
        bbox_flat = bbox_flat[:, :, :hw]
    return (logits_flat.reshape(n, a, h, w),
            bbox_flat.reshape(n, a4, h, w))


@functools.partial(jax.jit, static_argnames=("num_anchors",))
def _rpn_head_forward(levels, w_fused, b_fused, *, num_anchors):
    """All FPN levels under one jit (one dispatch, weights stay resident)."""
    logits, bbox = [], []
    for y in levels:
        lg, bb = _rpn_head_single(y, w_fused, b_fused, num_anchors)
        logits.append(lg)
        bbox.append(bb)
    return tuple(logits), tuple(bbox)


class RPNHeadConvRegressorPallas:
    """JAX/Pallas equivalent of the PyTorch RPNHeadConvRegressor."""

    def __init__(self, in_channels, num_anchors, key):
        k1, k2 = jax.random.split(key)
        self.num_anchors = num_anchors
        # PyTorch Conv2d(1x1) weight is (out, in, 1, 1) == matmul (out, in).
        # Weights ~ N(0, 0.01), biases = 0, matching the module init.
        self.w_cls = (0.01 * jax.random.normal(
            k1, (num_anchors, in_channels))).astype(jnp.float32)
        self.b_cls = jnp.zeros((num_anchors,), jnp.float32)
        self.w_box = (0.01 * jax.random.normal(
            k2, (num_anchors * 4, in_channels))).astype(jnp.float32)
        self.b_box = jnp.zeros((num_anchors * 4,), jnp.float32)
        # Fused parameters used by the kernel (one MXU pass for both heads).
        self.w_fused = jnp.concatenate([self.w_cls, self.w_box], axis=0)
        self.b_fused = jnp.concatenate([self.b_cls, self.b_box])[:, None]

    def __call__(self, x):
        assert isinstance(x, (list, tuple))
        logits, bbox = _rpn_head_forward(
            tuple(x), self.w_fused, self.b_fused,
            num_anchors=self.num_anchors)
        return list(logits), list(bbox)


# ---------------------------------------------------------------------------
# Plain-JAX reference (1x1 conv == channel matmul) for sanity checking.
# ---------------------------------------------------------------------------
def _reference(x_list, w_cls, b_cls, w_box, b_box):
    logits, bbox = [], []
    for y in x_list:
        lg = jnp.einsum("oc,nchw->nohw", w_cls, y) + b_cls[None, :, None, None]
        bb = jnp.einsum("oc,nchw->nohw", w_box, y) + b_box[None, :, None, None]
        logits.append(lg)
        bbox.append(bb)
    return logits, bbox


if __name__ == "__main__":
    key = jax.random.PRNGKey(0)
    k_param, k_x0, k_x1 = jax.random.split(key, 3)

    in_channels = 4
    num_anchors = 3

    # Two feature-map levels (FPN-style list input), NCHW.
    x0 = jax.random.normal(k_x0, (2, in_channels, 16, 16), jnp.float32)
    x1 = jax.random.normal(k_x1, (2, in_channels, 8, 8), jnp.float32)
    x = [x0, x1]

    head = RPNHeadConvRegressorPallas(in_channels, num_anchors, k_param)
    logits, bbox_reg = head(x)
    jax.block_until_ready((logits, bbox_reg))

    # Verify against the plain-JAX reference.
    ref_logits, ref_bbox = _reference(
        x, head.w_cls, head.b_cls, head.w_box, head.b_box)
    for out, ref in zip(logits + bbox_reg, ref_logits + ref_bbox):
        assert out.shape == ref.shape, (out.shape, ref.shape)
        assert jnp.allclose(out, ref, atol=1e-5, rtol=1e-5)

    print("KERNEL_OK")
</pallas_src>

<mosaic_0001>
module attributes {stable_mosaic.version = 11 : i64} {
  func.func @_rpn_head_kernel(%arg0: i32, %arg1: i32, %arg2: memref<1x4x256xf32, #tpu.memory_space<vmem>>, %arg3: memref<15x4xf32, #tpu.memory_space<vmem>>, %arg4: memref<15x1xf32, #tpu.memory_space<vmem>>, %arg5: memref<1x3x256xf32, #tpu.memory_space<vmem>>, %arg6: memref<1x12x256xf32, #tpu.memory_space<vmem>>) attributes {dimension_semantics = [#tpu.dimension_semantics<parallel>, #tpu.dimension_semantics<parallel>], iteration_bounds = array<i64: 2, 1>, scalar_prefetch = 0 : i64, scratch_operands = 0 : i64, tpu.core_type = #tpu.core_type<tc>, window_params = [{transform_indices = @transform_0, window_bounds = array<i64: 1, 4, 256>}, {pipeline_mode = #tpu.pipeline_mode<synchronous>, transform_indices = @transform_1, window_bounds = array<i64: 15, 4>}, {pipeline_mode = #tpu.pipeline_mode<synchronous>, transform_indices = @transform_2, window_bounds = array<i64: 15, 1>}, {transform_indices = @transform_3, window_bounds = array<i64: 1, 3, 256>}, {transform_indices = @transform_4, window_bounds = array<i64: 1, 12, 256>}]} {
    %c0 = arith.constant 0 : index
    %c0_0 = arith.constant 0 : index
    %c0_1 = arith.constant 0 : index
    %0 = vector.load %arg2[%c0, %c0_0, %c0_1] : memref<1x4x256xf32, #tpu.memory_space<vmem>>, vector<1x4x256xf32>
    %1 = vector.shape_cast %0 : vector<1x4x256xf32> to vector<4x256xf32>
    %c0_2 = arith.constant 0 : index
    %c0_3 = arith.constant 0 : index
    %2 = vector.load %arg3[%c0_2, %c0_3] : memref<15x4xf32, #tpu.memory_space<vmem>>, vector<15x4xf32>
    %cst = arith.constant dense<0.000000e+00> : vector<15x256xf32>
    %3 = tpu.matmul %2, %1, %cst {dimension_numbers = #tpu.dot_dimension_numbers<[1], [0], [0], [1], [0, 0, 1, 1], [], []>} : vector<15x4xf32>, vector<4x256xf32>, vector<15x256xf32> -> vector<15x256xf32>
    %c0_4 = arith.constant 0 : index
    %c0_5 = arith.constant 0 : index
    %4 = vector.load %arg4[%c0_4, %c0_5] : memref<15x1xf32, #tpu.memory_space<vmem>>, vector<15x1xf32>
    %5 = vector.broadcast %4 : vector<15x1xf32> to vector<15x256xf32>
    %6 = arith.addf %3, %5 : vector<15x256xf32>
    %7 = vector.extract_strided_slice %6 {offsets = [0, 0], sizes = [3, 256], strides = [1, 1]} : vector<15x256xf32> to vector<3x256xf32>
    %c0_6 = arith.constant 0 : index
    %c0_7 = arith.constant 0 : index
    %c0_8 = arith.constant 0 : index
    %8 = vector.load %arg5[%c0_6, %c0_7, %c0_8] : memref<1x3x256xf32, #tpu.memory_space<vmem>>, vector<1x3x256xf32>
    %9 = vector.shape_cast %8 : vector<1x3x256xf32> to vector<3x256xf32>
    %10 = vector.shape_cast %7 : vector<3x256xf32> to vector<1x3x256xf32>
    tpu.vector_store %arg5[%c0_6, %c0_7, %c0_8], %10 {strides = array<i32>} : memref<1x3x256xf32, #tpu.memory_space<vmem>>, vector<1x3x256xf32>,
    %11 = vector.extract_strided_slice %6 {offsets = [3, 0], sizes = [12, 256], strides = [1, 1]} : vector<15x256xf32> to vector<12x256xf32>
    %c0_9 = arith.constant 0 : index
    %c0_10 = arith.constant 0 : index
    %c0_11 = arith.constant 0 : index
    %12 = vector.load %arg6[%c0_9, %c0_10, %c0_11] : memref<1x12x256xf32, #tpu.memory_space<vmem>>, vector<1x12x256xf32>
    %13 = vector.shape_cast %12 : vector<1x12x256xf32> to vector<12x256xf32>
    %14 = vector.shape_cast %11 : vector<12x256xf32> to vector<1x12x256xf32>
    tpu.vector_store %arg6[%c0_9, %c0_10, %c0_11], %14 {strides = array<i32>} : memref<1x12x256xf32, #tpu.memory_space<vmem>>, vector<1x12x256xf32>,
    return
  }
  func.func @transform_0(%arg0: i32, %arg1: i32) -> (i32, i32, i32) {
    %c0_i32 = arith.constant 0 : i32
    %c0_i32_0 = arith.constant 0 : i32
    return %arg0, %c0_i32, %arg1 : i32, i32, i32
  }
  func.func @transform_1(%arg0: i32, %arg1: i32) -> (i32, i32) {
    %c0_i32 = arith.constant 0 : i32
    %c0_i32_0 = arith.constant 0 : i32
    %c0_i32_1 = arith.constant 0 : i32
    return %c0_i32, %c0_i32_0 : i32, i32
  }
  func.func @transform_2(%arg0: i32, %arg1: i32) -> (i32, i32) {
    %c0_i32 = arith.constant 0 : i32
    %c0_i32_0 = arith.constant 0 : i32
    %c0_i32_1 = arith.constant 0 : i32
    return %c0_i32, %c0_i32_0 : i32, i32
  }
  func.func @transform_3(%arg0: i32, %arg1: i32) -> (i32, i32, i32) {
    %c0_i32 = arith.constant 0 : i32
    %c0_i32_0 = arith.constant 0 : i32
    return %arg0, %c0_i32, %arg1 : i32, i32, i32
  }
  func.func @transform_4(%arg0: i32, %arg1: i32) -> (i32, i32, i32) {
    %c0_i32 = arith.constant 0 : i32
    %c0_i32_0 = arith.constant 0 : i32
    return %arg0, %c0_i32, %arg1 : i32, i32, i32
  }
}

module attributes {stable_mosaic.version = 11 : i64} {
  func.func @_rpn_head_kernel(%arg0: i32, %arg1: i32, %arg2: memref<1x4x128xf32, #tpu.memory_space<vmem>>, %arg3: memref<15x4xf32, #tpu.memory_space<vmem>>, %arg4: memref<15x1xf32, #tpu.memory_space<vmem>>, %arg5: memref<1x3x128xf32, #tpu.memory_space<vmem>>, %arg6: memref<1x12x128xf32, #tpu.memory_space<vmem>>) attributes {dimension_semantics = [#tpu.dimension_semantics<parallel>, #tpu.dimension_semantics<parallel>], iteration_bounds = array<i64: 2, 1>, scalar_prefetch = 0 : i64, scratch_operands = 0 : i64, tpu.core_type = #tpu.core_type<tc>, window_params = [{transform_indices = @transform_0, window_bounds = array<i64: 1, 4, 128>}, {pipeline_mode = #tpu.pipeline_mode<synchronous>, transform_indices = @transform_1, window_bounds = array<i64: 15, 4>}, {pipeline_mode = #tpu.pipeline_mode<synchronous>, transform_indices = @transform_2, window_bounds = array<i64: 15, 1>}, {transform_indices = @transform_3, window_bounds = array<i64: 1, 3, 128>}, {transform_indices = @transform_4, window_bounds = array<i64: 1, 12, 128>}]} {
    %c0 = arith.constant 0 : index
    %c0_0 = arith.constant 0 : index
    %c0_1 = arith.constant 0 : index
    %0 = vector.load %arg2[%c0, %c0_0, %c0_1] : memref<1x4x128xf32, #tpu.memory_space<vmem>>, vector<1x4x128xf32>
    %1 = vector.shape_cast %0 : vector<1x4x128xf32> to vector<4x128xf32>
    %c0_2 = arith.constant 0 : index
    %c0_3 = arith.constant 0 : index
    %2 = vector.load %arg3[%c0_2, %c0_3] : memref<15x4xf32, #tpu.memory_space<vmem>>, vector<15x4xf32>
    %cst = arith.constant dense<0.000000e+00> : vector<15x128xf32>
    %3 = tpu.matmul %2, %1, %cst {dimension_numbers = #tpu.dot_dimension_numbers<[1], [0], [0], [1], [0, 0, 1, 1], [], []>} : vector<15x4xf32>, vector<4x128xf32>, vector<15x128xf32> -> vector<15x128xf32>
    %c0_4 = arith.constant 0 : index
    %c0_5 = arith.constant 0 : index
    %4 = vector.load %arg4[%c0_4, %c0_5] : memref<15x1xf32, #tpu.memory_space<vmem>>, vector<15x1xf32>
    %5 = vector.broadcast %4 : vector<15x1xf32> to vector<15x128xf32>
    %6 = arith.addf %3, %5 : vector<15x128xf32>
    %7 = vector.extract_strided_slice %6 {offsets = [0, 0], sizes = [3, 128], strides = [1, 1]} : vector<15x128xf32> to vector<3x128xf32>
    %c0_6 = arith.constant 0 : index
    %c0_7 = arith.constant 0 : index
    %c0_8 = arith.constant 0 : index
    %8 = vector.load %arg5[%c0_6, %c0_7, %c0_8] : memref<1x3x128xf32, #tpu.memory_space<vmem>>, vector<1x3x128xf32>
    %9 = vector.shape_cast %8 : vector<1x3x128xf32> to vector<3x128xf32>
    %10 = vector.shape_cast %7 : vector<3x128xf32> to vector<1x3x128xf32>
    tpu.vector_store %arg5[%c0_6, %c0_7, %c0_8], %10 {strides = array<i32>} : memref<1x3x128xf32, #tpu.memory_space<vmem>>, vector<1x3x128xf32>,
    %11 = vector.extract_strided_slice %6 {offsets = [3, 0], sizes = [12, 128], strides = [1, 1]} : vector<15x128xf32> to vector<12x128xf32>
    %c0_9 = arith.constant 0 : index
    %c0_10 = arith.constant 0 : index
    %c0_11 = arith.constant 0 : index
    %12 = vector.load %arg6[%c0_9, %c0_10, %c0_11] : memref<1x12x128xf32, #tpu.memory_space<vmem>>, vector<1x12x128xf32>
    %13 = vector.shape_cast %12 : vector<1x12x128xf32> to vector<12x128xf32>
    %14 = vector.shape_cast %11 : vector<12x128xf32> to vector<1x12x128xf32>
    tpu.vector_store %arg6[%c0_9, %c0_10, %c0_11], %14 {strides = array<i32>} : memref<1x12x128xf32, #tpu.memory_space<vmem>>, vector<1x12x128xf32>,
    return
  }
  func.func @transform_0(%arg0: i32, %arg1: i32) -> (i32, i32, i32) {
    %c0_i32 = arith.constant 0 : i32
    %c0_i32_0 = arith.constant 0 : i32
    return %arg0, %c0_i32, %arg1 : i32, i32, i32
  }
  func.func @transform_1(%arg0: i32, %arg1: i32) -> (i32, i32) {
    %c0_i32 = arith.constant 0 : i32
    %c0_i32_0 = arith.constant 0 : i32
    %c0_i32_1 = arith.constant 0 : i32
    return %c0_i32, %c0_i32_0 : i32, i32
  }
  func.func @transform_2(%arg0: i32, %arg1: i32) -> (i32, i32) {
    %c0_i32 = arith.constant 0 : i32
    %c0_i32_0 = arith.constant 0 : i32
    %c0_i32_1 = arith.constant 0 : i32
    return %c0_i32, %c0_i32_0 : i32, i32
  }
  func.func @transform_3(%arg0: i32, %arg1: i32) -> (i32, i32, i32) {
    %c0_i32 = arith.constant 0 : i32
    %c0_i32_0 = arith.constant 0 : i32
    return %arg0, %c0_i32, %arg1 : i32, i32, i32
  }
  func.func @transform_4(%arg0: i32, %arg1: i32) -> (i32, i32, i32) {
    %c0_i32 = arith.constant 0 : i32
    %c0_i32_0 = arith.constant 0 : i32
    return %arg0, %c0_i32, %arg1 : i32, i32, i32
  }
}

</mosaic_0001>

<bundles_post_ra>
// kernel: _rpn_head_forward.2
= control target key start
LH: loop header
LB: loop body
LE: loop exit
PB: predicated region body
PF: predicated region fallthrough
CT: control target
= control target key end

     0   :  { %s627_s15 = smov 0   ;;  %s629_s16 = smov 0   ;;  %s683_s0 = inlined_call_operand.vmem [shape: f32[2,4,256], index: 0, kind: input, shape index: {}]   ;;  %s684_s1 = inlined_call_operand.vmem [shape: f32[15,4], index: 1, kind: input, shape index: {}]   ;;  %s685_s2 = inlined_call_operand.vmem [shape: f32[15,1], index: 2, kind: input, shape index: {}]   ;;  %s686_s3 = inlined_call_operand.vmem [shape: f32[2,3,256], index: 3, kind: output, shape index: {0}]   ;;  %s687_s4 = inlined_call_operand.vmem [shape: f32[2,12,256], index: 4, kind: output, shape index: {1}]  }
   0x1   :  { %s631_s17 = smov 0  }
   0x2 LB: > { %s27_s18 = sadd.s32 1, %s594_s16  ;;  %p530_p0 = scmp.ge.s32.totalorder %s598_s17, 1  ;;  %s598_s17 = sphi %s631_s17, %s15_s17   ;;  %s594_s16 = sphi %s629_s16, %s689_s16   ;;  %s590_s15 = sphi %s627_s15, %s688_s15  }
   0x3   : > { %p29_p1 = scmp.ge.s32.totalorder %s27_s18, 2  ;;  %p188_p2 = scmp.lt.s32.totalorder %s598_s17, 3 }
   0x5   : > { %s691_s18 = smov (%p29_p1, %s27_s18), 0  ;;  %p189_p3 = pnand %p530_p0, %p188_p2 }
   0x6   : > { %p232_p4 = scmp.lt.s32.totalorder (!%p189_p3), %s590_s15, 1  ;;  %v600_v0 = vmov (!%p189_p3), 0.0   ;;  %v264_v1 = vld [vmem:[%s685_s2] sm:$0xff] (!%p189_p3)  ;;  %v601_v2 = vmov (!%p189_p3), 0   ;;  %v265_v3 = vld [vmem:[%s685_s2 + $0x8] sm:$0x7f] (!%p189_p3) }
   0x7   : > { %192 = sbr.rel (%p189_p3) target bundleno = 241 (0xf1), region = 32  ;;  %354 = vmatprep.mubr.f32.mxu0 (!%p189_p3), %v600_v0  ;;  %360 = vmatprep.mubr.f32.mxu1 (!%p189_p3), %v600_v0  ;;  %vm285_vm0 = vcmask (!%p189_p3), 1043456   ;;  %v262_v6 = vld [vmem:[%s684_s1] sm:$0xff] (!%p189_p3)  ;;  %vm278_vm1 = vcmask (!%p189_p3), 31744   ;;  %v263_v7 = vld [vmem:[%s684_s1 + $0x8] sm:$0x7f] (!%p189_p3) }
   0x8   : > { %574 = vset.pattern.permute.xlu0 (!%p189_p3), %v601_v2  ;;  %vm374_vm2 = vcmask (!%p189_p3), 1044480  }
   0x9   : > { %268 = vperm.xlu0 (!%p189_p3), %574, %v264_v1  }
   0xd   : > { %273 = vperm.xlu0 (!%p189_p3), %574, %v265_v3  }
   0xe   : > { %s693_s15 = smov (!%p232_p4, %s590_s15), 1 }
   0xf   : > { %s543_s21 = sshll.u32 %s693_s15, 3  ;;  %s545_s5 = sshll.u32 %s693_s15, 5 }
  0x10   : > { %s239_s26 = scalar_lea.vmem %s683_s0, %s543_s21  ;;  %s259_s8 = scalar_lea.vmem %s687_s4, %s545_s5 }
  0x11   : > { %v261_v4 = vld [vmem:[%s239_s26] sm:$0xff]  ;;  %s249_s11 = scalar_lea.vmem %s686_s3, %s543_s21 }
  0x12   : > { %v277_v5 = vcombine.high %v261_v4, %v261_v4 }
  0x14   : > { %537 = vmatprep.subr.msk.mxu0 %vm285_vm0, %v277_v5  ;;  %546 = vmatprep.subr.msk.mxu1 %vm285_vm0, %v277_v5 }
  0x15   : > { %538 = vmatpush1.msk.msra.mxu0 %vm285_vm0, %v261_v4  ;;  %547 = vmatpush1.msk.msra.mxu1 %vm285_vm0, %v261_v4 }
  0x16   : > { %539 = vmatmul.mubr.msk.f32.vlgmr.msra.gmra.mrb[0].mxu0 %vm278_vm1, %v262_v6  ;;  %540 = vmatmul.mubr.msk.f32.vlgmr.msra.gmra.mrb[0].mxu1 %vm278_vm1, %v263_v7 }
  0x88   : > { %v269_v8 = vpop.permute.xlu0 %268 }
  0x8c   : > { %v274_v9 = vpop.permute.xlu0 %273 }
  0xe9   : > { %v356_v10 = vpop.f32.mrb[0].mxu0  ;;  %v362_v11 = vpop.f32.mrb[0].mxu1 }
  0xea   : > { %v357_v12 = vadd.f32 %v356_v10, %v269_v8  ;;  %v363_v13 = vadd.f32 %v362_v11, %v274_v9  ;;  %v358_v14 = vpop.f32.mrb[1].mxu0  ;;  %v364_v15 = vpop.f32.mrb[1].mxu1 }
  0xeb   : > { %v359_v16 = vadd.f32 %v358_v14, %v269_v8  ;;  %v365_v17 = vadd.f32 %v364_v15, %v274_v9 }
  0xec   : > { %v375_v18 = vrot.slane %v357_v12, 3  ;;  %v376_v19 = vrot.slane %v363_v13, 3 }
  0xed   : > { %v369_v20 = vcombine.low %v357_v12, %v359_v16  ;;  %v378_v21 = vrot.slane %v359_v16, 3  ;;  %v379_v22 = vrot.slane %v365_v17, 3 }
  0xee   : > { %v377_v23 = vsel %vm374_vm2, %v375_v18, %v376_v19  ;;  %387 = vst [vmem:[%s259_s8 + $0x10] sm:$0xf] %v376_v19 }
  0xef   : > { %385 = vst [vmem:[%s259_s8] sm:$0xff] %v377_v23  ;;  %371 = vst [vmem:[%s249_s11] sm:$0x77] %v369_v20  ;;  %v380_v24 = vsel %vm374_vm2, %v378_v21, %v379_v22 }
  0xf0   : > { %388 = vst [vmem:[%s259_s8 + $0x18] sm:$0xf] %v379_v22  ;;  %386 = vst [vmem:[%s259_s8 + $0x8] sm:$0xff] %v380_v24 }
  0xf1 PF: > { %s15_s17 = sadd.s32 1, %s598_s17   ;;  %s688_s15 = smov %s594_s16 }
  0xf2   : > { %p12_p5 = scmp.ge.s32.totalorder %s15_s17, 4   ;;  %s689_s16 = smov %s691_s18 }
  0xf4   :  { %14 = sbr.rel (!%p12_p5) target bundleno = 2 (0x2), region = 74 }

// kernel: _rpn_head_forward.3
= control target key start
LH: loop header
LB: loop body
LE: loop exit
PB: predicated region body
PF: predicated region fallthrough
CT: control target
= control target key end

     0   :  { %s640_s15 = smov 0   ;;  %s642_s16 = smov 0   ;;  %s727_s0 = inlined_call_operand.vmem [shape: f32[2,4,191], index: 0, kind: input, shape index: {}]   ;;  %s728_s1 = inlined_call_operand.vmem [shape: f32[15,4], index: 1, kind: input, shape index: {}]   ;;  %s729_s2 = inlined_call_operand.vmem [shape: f32[15,1], index: 2, kind: input, shape index: {}]   ;;  %s730_s3 = inlined_call_operand.vmem [shape: f32[2,3,191], index: 3, kind: output, shape index: {0}]   ;;  %s731_s4 = inlined_call_operand.vmem [shape: f32[2,12,191], index: 4, kind: output, shape index: {1}]  }
   0x1   :  { %s644_s17 = smov 0   ;;  %s646_s18 = smov 0  }
   0x2   :  { %s648_s19 = smov 0  }
   0x3 LB: > { %s503_s20 = sadd.s32 4294967295, %s612_s19   ;;  %s27_s21 = sadd.s32 1, %s608_s18  ;;  %s612_s19 = sphi %s648_s19, %s15_s19   ;;  %s608_s18 = sphi %s646_s18, %s736_s18   ;;  %s604_s17 = sphi %s644_s17, %s735_s17   ;;  %s600_s16 = sphi %s642_s16, %s734_s16   ;;  %s596_s15 = sphi %s640_s15, %s733_s15  }
   0x4   : > { %p29_p0 = scmp.ge.s32.totalorder %s27_s21, 2  ;;  %s134_s22 = sadd.s32 1, %s600_s16 }
   0x5   : > { %p144_p1 = scmp.ne.s32.totalorder %s600_s16, %s596_s15  ;;  %p145_p2 = scmp.eq.s32.totalorder %s503_s20, 1 }
   0x6   : > { %s738_s21 = smov (%p29_p0, %s27_s21), 0  ;;  %p507_p4 = scmp.ge.s32.totalorder %s612_s19, 1 }
   0x7   : > { %p672_p3 = por %p145_p2, %p144_p1  ;;  %s129_s24 = ssub.s32 %s608_s18, %s738_s21 }
   0x8   : > { %p186_p5 = scmp.lt.s32.totalorder %s612_s19, 3  ;;  %p132_p6 = scmp.eq.s32.totalorder %s129_s24, 0 }
   0xa   : > { %p187_p7 = pnand %p507_p4, %p186_p5 }
   0xb   : > { %s681_s25 = scalar_select %p132_p6, %s600_s16, %s134_s22  }
   0xc   : > { %190 = sbr.rel (%p187_p7) target bundleno = 250 (0xfa), region = 32  ;;  %p222_p8 = scmp.lt.s32.totalorder (!%p187_p7), %s604_s17, 1  ;;  %v239_v0 = vld [vmem:[%s728_s1] sm:$0xff] (!%p187_p7)  ;;  %vm253_vm0 = vcmask (!%p187_p7), 31744   ;;  %v614_v2 = vmov (!%p187_p7), 0   ;;  %vm260_vm1 = vcmask (!%p187_p7), 1043456  }
   0xd   : > { %529 = vmatprep.mubr.msk.f32.mxu0 (!%p187_p7), %vm253_vm0, %v239_v0  ;;  %v241_v1 = vld [vmem:[%s729_s2] sm:$0xff] (!%p187_p7)  ;;  %573 = vset.pattern.permute.xlu0 (!%p187_p7), %v614_v2  ;;  %v242_v3 = vld [vmem:[%s729_s2 + $0x8] sm:$0x7f] (!%p187_p7)  ;;  %s219_s13 = sand.u32 (!%p187_p7), 1, %s596_s15  }
   0xe   : > { %245 = vperm.xlu0 (!%p187_p7), %573, %v241_v1   ;;  %v240_v5 = vld [vmem:[%s728_s1 + $0x8] sm:$0x7f] (!%p187_p7)  ;;  %s508_s14 = sshll.u32 (!%p187_p7), %s219_s13, 4 }
   0xf   : > { %s221_s26 = scalar_lea.vmem (!%p187_p7), [#allocation2], %s508_s14 }
  0x12   : > { %250 = vperm.xlu0 (!%p187_p7), %573, %v242_v3  }
  0x13   : > { %s223_s30 = scalar_select %p222_p8, %s604_s17, 1 }
  0x14   : > { %s523_s27 = sshll.u32 (%p672_p3), %s604_s17, 5 }
  0x15   : > { %s521_s5 = sshll.u32 %s223_s30, 3  ;;  %s363_s29 = scalar_lea.vmem (%p672_p3), %s731_s4, %s523_s27 }
  0x16   : > { %s229_s10 = scalar_lea.vmem %s727_s0, %s521_s5  ;;  %s237_s24 = scalar_lea.vmem %s730_s3, %s521_s5 }
  0x17   : > { %v238_v4 = vld [vmem:[%s229_s10] sm:$0xf] }
  0x18   : > { %527 = vmatprep.subr.msk.mxu0 %vm260_vm1, %v238_v4 }
  0x19   : > { %528 = vmatpush3.msk.msra.mxu0 %vm260_vm1, %v238_v4 }
  0x1a   : > { %530 = vmatmul.mubr.msk.f32.vlgmr.msra.gmra.mrb[0].mxu0 %vm253_vm0, %v240_v5 }
  0x8d   : > { %v246_v6 = vpop.permute.xlu0 %245 }
  0x91   : > { %v251_v7 = vpop.permute.xlu0 %250 }
  0xeb   : > { %359 = sbr.rel (!%p672_p3) target bundleno = 250 (0xfa), region = 40 }
  0xed   : > { %v531_v8 = vpop.f32.mrb[0].mxu0 }
  0xee   : > { %v336_v9 = vadd.f32 %v531_v8, %v251_v7  ;;  %v330_v10 = vpop.f32.mrb[1].mxu0 }
  0xef   : > { %v331_v11 = vadd.f32 %v330_v10, %v246_v6 }
  0xf0   : > { %341 = vst [vmem:[%s221_s26 + $0x5] sm:$0x7f] %v336_v9 }
  0xf1   : > { %339 = vst [vmem:[%s237_s24] sm:$0x7] %v331_v11  ;;  %340 = vst [vmem:[%s221_s26 - $0x3] sm:$0xf8] %v331_v11 }
  0xf7   : > { %v395_v13 = vld [vmem:[%s221_s26 + $0x8] sm:$0xff] }
  0xf8   : > { %v393_v12 = vld [vmem:[%s221_s26] sm:$0xff]  ;;  %396 = vst [vmem:[%s363_s29 + $0x10] sm:$0xff] %v395_v13 }
  0xf9   : > { %394 = vst [vmem:[%s363_s29] sm:$0xff] %v393_v12 }
  0xfa PF: > { %s15_s19 = sadd.s32 1, %s612_s19   ;;  %s733_s15 = smov %s600_s16 }
  0xfb   : > { %p12_p9 = scmp.ge.s32.totalorder %s15_s19, 4   ;;  %s734_s16 = smov %s681_s25 }
  0xfc   : > { %s735_s17 = smov %s608_s18  ;;  %s736_s18 = smov %s738_s21 }
  0xfd   :  { %14 = sbr.rel (!%p12_p9) target bundleno = 3 (0x3), region = 112 }

</bundles_post_ra>
